<compile_context>
chip_gen: v6e
topology: v6e:2x2x1
jax: 0.10.0
libtpu: 0.0.40
codegen_flags: <defaults>
</compile_context>

<pallas_src>
import functools

import jax
import jax.numpy as jnp
from jax.experimental import pallas as pl
from jax.experimental.pallas import tpu as pltpu

NEG_BIG = -1e30   # additive mask bias for non-edges


def _fit_tile(n, preferred):
    t = min(preferred, n)
    if n % t != 0:
        t = n     # full-extent block is always a legal BlockSpec
    return t


# ---------------------------------------------------------------------------------
# Projection kernel:  zp = x @ Wp   (Wp has the per-head attention vectors folded in)
# Outputs:  z_aug = [z | 1]  (bf16, MXU-ready; ones column -> f32 row-sums on the MXU)
#           s_src, s_dst    (f32 per-head attention logits)
# ---------------------------------------------------------------------------------
def _gat_project_kernel(x_ref, w_ref, z_ref, ssrc_ref, sdst_ref, *, dz, num_heads):
    zp = jnp.dot(x_ref[...].astype(jnp.bfloat16), w_ref[...],
                 preferred_element_type=jnp.float32)              # [Tm, dz + 2H]
    z_ref[:, :dz] = zp[:, :dz].astype(z_ref.dtype)
    z_ref[:, dz:dz + 1] = jnp.ones((z_ref.shape[0], 1), z_ref.dtype)
    ssrc_ref[...] = zp[:, dz:dz + num_heads]
    sdst_ref[...] = zp[:, dz + num_heads:dz + 2 * num_heads]


def _project(x, w_packed, *, dz, num_heads, row_tile, vmem_limit):
    n, fin = x.shape
    tm = _fit_tile(n, row_tile)
    kernel = functools.partial(_gat_project_kernel, dz=dz, num_heads=num_heads)
    return pl.pallas_call(
        kernel,
        grid=(n // tm,),
        in_specs=[pl.BlockSpec((tm, fin), lambda i: (i, 0)),
                  pl.BlockSpec(tuple(w_packed.shape), lambda i: (0, 0))],
        out_specs=(pl.BlockSpec((tm, dz + 1), lambda i: (i, 0)),
                   pl.BlockSpec((tm, num_heads), lambda i: (i, 0)),
                   pl.BlockSpec((tm, num_heads), lambda i: (i, 0))),
        out_shape=(jax.ShapeDtypeStruct((n, dz + 1), jnp.bfloat16),
                   jax.ShapeDtypeStruct((n, num_heads), jnp.float32),
                   jax.ShapeDtypeStruct((n, num_heads), jnp.float32)),
        compiler_params=pltpu.CompilerParams(
            dimension_semantics=("parallel",),
            vmem_limit_bytes=vmem_limit),
    )(x, w_packed)


# ---------------------------------------------------------------------------------
# Tiled masked-attention aggregation (flash-style online softmax over src tiles).
# grid = (N // Td, N // Ts); dest axis 'parallel', src axis 'arbitrary'.
# ---------------------------------------------------------------------------------
def _gat_attention_kernel(z_ref, s_srcT_ref, s_dst_ref, bias_ref, out_ref,
                          m_ref, l_ref, acc_ref,
                          *, num_heads, head_dim, apply_elu, compute_dtype):
    j = pl.program_id(1)
    dz = num_heads * head_dim

    @pl.when(j == 0)
    def _init():
        m_ref[...] = jnp.full_like(m_ref, NEG_BIG)
        l_ref[...] = jnp.zeros_like(l_ref)
        acc_ref[...] = jnp.zeros_like(acc_ref)

    # Per-tile work hoisted out of the head loop (shared by all heads).
    bias = bias_ref[...].astype(compute_dtype)       # [Td, Ts] additive mask bias
    z_aug = z_ref[...]                               # [Ts, Dz+1] bf16, last col == 1
    s_dst = s_dst_ref[...].astype(compute_dtype)     # [Td, H]
    s_srcT = s_srcT_ref[...].astype(compute_dtype)   # [H, Ts] (pre-transposed in wrapper)

    for h in range(num_heads):                       # static unroll, H is small
        # e[v, u] = leaky_relu(a_src.z_u + a_dst.z_v) + mask_bias[v, u]
        e = s_dst[:, h:h + 1] + s_srcT[h:h + 1, :]   # [Td, Ts]
        e = jnp.where(e > 0, e, 0.01 * e)            # leaky_relu (slope 0.01)
        e = e + bias                                 # no bool mask / where-zero on hot path

        m_prev = m_ref[h]                            # [Td, 1] f32
        # f32 row-max reduce (portable across generations); the N^2 chain stays bf16.
        m_new = jnp.maximum(
            m_prev, jnp.max(e.astype(jnp.float32), axis=-1, keepdims=True))
        p = jnp.exp(e - m_new.astype(compute_dtype))  # [Td, Ts]

        # One MXU pass against the full lane-dense z slab; the trailing ones column
        # yields the f32 row-sum of p for free.
        pa = jnp.dot(p.astype(jnp.bfloat16), z_aug,
                     preferred_element_type=jnp.float32)          # [Td, Dz+1]

        scale = jnp.exp(m_prev - m_new)              # [Td, 1] f32 online-softmax rescale
        l_ref[h] = scale * l_ref[h] + pa[:, dz:dz + 1]
        acc_ref[h] = scale * acc_ref[h] + pa[:, h * head_dim:(h + 1) * head_dim]
        m_ref[h] = m_new

    @pl.when(j == pl.num_programs(1) - 1)
    def _finalize():
        for h in range(num_heads):
            inv = pl.reciprocal(jnp.maximum(l_ref[h], 1e-30), approx=True)  # EUP slot
            o = acc_ref[h] * inv                                            # [Td, HID]
            # Zero-in-degree rows: running max never left the mask floor -> output 0
            # (matches the masked reference semantics).
            o = jnp.where(m_ref[h] > -1e20, o, 0.0)
            if apply_elu:
                # F.elu fused into layer 1; exp(min(x,0))-1 avoids overflow on the
                # unselected branch (expm1-equivalent to ~1e-7 abs).
                o = jnp.where(o > 0, o, jnp.exp(jnp.minimum(o, 0.0)) - 1.0)
            out_ref[:, h * head_dim:(h + 1) * head_dim] = o.astype(out_ref.dtype)


def _attention(z_aug, s_srcT, s_dst, bias, *, num_heads, head_dim, apply_elu,
               out_dtype, compute_dtype, dest_tile, src_tile, vmem_limit):
    n = bias.shape[0]
    dz = num_heads * head_dim
    td = _fit_tile(n, dest_tile)
    ts = _fit_tile(n, src_tile)
    kernel = functools.partial(_gat_attention_kernel, num_heads=num_heads,
                               head_dim=head_dim, apply_elu=apply_elu,
                               compute_dtype=compute_dtype)
    return pl.pallas_call(
        kernel,
        grid=(n // td, n // ts),
        in_specs=[
            pl.BlockSpec((ts, dz + 1), lambda i, j: (j, 0)),        # z_aug (src tile)
            pl.BlockSpec((num_heads, ts), lambda i, j: (0, j)),     # s_srcT (src tile)
            pl.BlockSpec((td, num_heads), lambda i, j: (i, 0)),     # s_dst (dest tile)
            pl.BlockSpec((td, ts), lambda i, j: (i, j)),            # additive mask bias
        ],
        out_specs=pl.BlockSpec((td, dz), lambda i, j: (i, 0)),      # resident across j
        out_shape=jax.ShapeDtypeStruct((n, dz), out_dtype),
        scratch_shapes=[
            pltpu.VMEM((num_heads, td, 1), jnp.float32),            # running max
            pltpu.VMEM((num_heads, td, 1), jnp.float32),            # running denom
            pltpu.VMEM((num_heads, td, head_dim), jnp.float32),     # running accumulator
        ],
        compiler_params=pltpu.CompilerParams(
            dimension_semantics=("parallel", "arbitrary"),
            vmem_limit_bytes=vmem_limit),
    )(z_aug, s_srcT, s_dst, bias)


# ---------------------------------------------------------------------------------
# Wrapper: two GAT layers = 2 x (projection + tiled attention).
# ---------------------------------------------------------------------------------
def gat_forward(h, adj, params, *, dest_tile=128, src_tile=128):
    """Two-layer GAT forward.  h:[N,Fin] f32, adj:[N,N] with adj[v,u] != 0 iff u->v.

    For large graphs raise dest/src tiles (e.g. 256/512 on v5e/v6e); keep them modest
    on v7x (64 MiB VMEM).  Defaults exercise a real multi-tile grid at demo sizes.
    """
    n = h.shape[0]
    heads1 = params["layer1"]
    num_heads = len(heads1)
    hid_dim = heads1[0][0].shape[1]
    w2, a2s, a2d = params["layer2"][0]
    out_dim = w2.shape[1]

    # Generation-dependent knobs (conservative defaults if detection is inconclusive).
    kind = jax.devices()[0].device_kind.lower()
    is_v6_plus = ("v6" in kind) or ("v7" in kind) or ("7x" in kind)
    is_v7 = ("v7" in kind) or ("7x" in kind)
    compute_dtype = jnp.bfloat16 if is_v6_plus else jnp.float32   # bf16 VPU/EUP on v6e/v7x
    vmem_limit = (96 if (is_v6_plus and not is_v7) or ("v5" in kind) else 48) * 1024 * 1024

    # Fold attention vectors into the fc matmuls and pre-cast the packed weights once:
    #   s_src = z @ a_src = h @ (W @ a_src), likewise for dst.
    w1_cols = [w for (w, _, _) in heads1]
    w1_cols += [w @ a_s for (w, a_s, _) in heads1]
    w1_cols += [w @ a_d for (w, _, a_d) in heads1]
    w1p = jnp.concatenate(w1_cols, axis=1).astype(jnp.bfloat16)        # [Fin, H*HID + 2H]
    w2p = jnp.concatenate([w2, w2 @ a2s, w2 @ a2d], axis=1).astype(jnp.bfloat16)

    # Additive attention-mask bias (0 on edge, -1e30 off edge), bf16: half the f32 DMA.
    bias = jnp.where(adj != 0, 0.0, NEG_BIG).astype(jnp.bfloat16)

    # ---- Layer 1 (H heads, merge='cat') + fused ELU, bf16 hand-off ----------------
    z1, s1_src, s1_dst = _project(h, w1p, dz=num_heads * hid_dim, num_heads=num_heads,
                                  row_tile=dest_tile, vmem_limit=vmem_limit)
    h1 = _attention(z1, s1_src.T, s1_dst, bias,
                    num_heads=num_heads, head_dim=hid_dim, apply_elu=True,
                    out_dtype=jnp.bfloat16, compute_dtype=compute_dtype,
                    dest_tile=dest_tile, src_tile=src_tile, vmem_limit=vmem_limit)

    # ---- Layer 2 (single head) -----------------------------------------------------
    z2, s2_src, s2_dst = _project(h1, w2p, dz=out_dim, num_heads=1,
                                  row_tile=dest_tile, vmem_limit=vmem_limit)
    out = _attention(z2, s2_src.T, s2_dst, bias,
                     num_heads=1, head_dim=out_dim, apply_elu=False,
                     out_dtype=jnp.float32, compute_dtype=compute_dtype,
                     dest_tile=dest_tile, src_tile=src_tile, vmem_limit=vmem_limit)
    return out


def init_gat_params(key, in_dim, hidden_dim, out_dim, num_heads):
    """Deterministic nn.Linear-style init (uniform +-1/sqrt(fan_in)), stored transposed."""
    def linear_t(k, fan_in, fan_out):
        bound = 1.0 / float(fan_in) ** 0.5
        return jax.random.uniform(k, (fan_in, fan_out), jnp.float32, -bound, bound)

    keys = jax.random.split(key, 2 * num_heads + 2)
    layer1 = []
    for i in range(num_heads):
        w = linear_t(keys[2 * i], in_dim, hidden_dim)          # fc weight (transposed)
        a = linear_t(keys[2 * i + 1], 2 * hidden_dim, 1)       # attn_fc weight (transposed)
        layer1.append((w, a[:hidden_dim, :], a[hidden_dim:, :]))
    w2 = linear_t(keys[-2], hidden_dim * num_heads, out_dim)
    a2 = linear_t(keys[-1], 2 * out_dim, 1)
    layer2 = [(w2, a2[:out_dim, :], a2[out_dim:, :])]
    return {"layer1": layer1, "layer2": layer2}


def _gat_reference(h, adj, params):
    """Pure-JAX f32 reference (mirrors the PyTorch module semantics)."""
    def layer(x, w, a_s, a_d):
        z = x @ w
        s_src = z @ a_s
        s_dst = z @ a_d
        e = s_dst + s_src.T
        e = jnp.where(e > 0.0, e, 0.01 * e)
        mask = adj != 0
        e = jnp.where(mask, e, NEG_BIG)
        e = e - jnp.max(e, axis=-1, keepdims=True)
        p = jnp.where(mask, jnp.exp(e), 0.0)
        denom = jnp.maximum(jnp.sum(p, axis=-1, keepdims=True), 1e-30)
        return (p / denom) @ z

    h1 = jnp.concatenate(
        [layer(h, w, a_s, a_d) for (w, a_s, a_d) in params["layer1"]], axis=1)
    h1 = jnp.where(h1 > 0.0, h1, jnp.expm1(h1))      # F.elu
    w2, a_s, a_d = params["layer2"][0]
    return layer(h1, w2, a_s, a_d)


if __name__ == "__main__":
    # Small but multi-tile: N=256 with 128-tiles gives a real (2 dest x 2 src) grid,
    # exercising the online-softmax accumulation across src tiles.
    N, IN_DIM, HID, OUT, HEADS = 256, 16, 8, 4, 2

    key = jax.random.PRNGKey(0)
    k_h, k_p = jax.random.split(key)
    h = jax.random.normal(k_h, (N, IN_DIM), dtype=jnp.float32)

    # Deterministic graph: self-loops + two forward ring edges (in-degree 3 per node),
    # so every node's incoming-edge softmax is well-defined.  adj[v,u]=1 iff u -> v.
    src = jnp.arange(N)
    adj = jnp.eye(N, dtype=jnp.float32)
    adj = adj.at[(src + 1) % N, src].set(1.0)
    adj = adj.at[(src + 5) % N, src].set(1.0)

    params = init_gat_params(k_p, IN_DIM, HID, OUT, HEADS)

    out = gat_forward(h, adj, params)
    out = jax.block_until_ready(out)

    assert out.shape == (N, OUT), out.shape
    assert bool(jnp.all(jnp.isfinite(out)))

    # Loose tolerance by design: bf16 MXU operands, bf16 softmax chain on v6e/v7x,
    # approx reciprocal, bf16 inter-layer hand-off.
    ref = _gat_reference(h, adj, params)
    err = float(jnp.max(jnp.abs(out - ref)))
    assert bool(jnp.allclose(out, ref, rtol=0.1, atol=0.1)), err

    print("KERNEL_OK")
</pallas_src>

<mosaic_0001>
module attributes {stable_mosaic.version = 11 : i64} {
  func.func @_gat_project_kernel(%arg0: i32, %arg1: memref<128x16xf32, #tpu.memory_space<vmem>>, %arg2: memref<16x20xbf16, #tpu.memory_space<vmem>>, %arg3: memref<128x17xbf16, #tpu.memory_space<vmem>>, %arg4: memref<128x2xf32, #tpu.memory_space<vmem>>, %arg5: memref<128x2xf32, #tpu.memory_space<vmem>>) attributes {dimension_semantics = [#tpu.dimension_semantics<parallel>], iteration_bounds = array<i64: 2>, scalar_prefetch = 0 : i64, scratch_operands = 0 : i64, tpu.core_type = #tpu.core_type<tc>, window_params = [{transform_indices = @transform_0, window_bounds = array<i64: 128, 16>}, {pipeline_mode = #tpu.pipeline_mode<synchronous>, transform_indices = @transform_1, window_bounds = array<i64: 16, 20>}, {transform_indices = @transform_2, window_bounds = array<i64: 128, 17>}, {transform_indices = @transform_3, window_bounds = array<i64: 128, 2>}, {transform_indices = @transform_4, window_bounds = array<i64: 128, 2>}]} {
    %c0 = arith.constant 0 : index
    %c0_0 = arith.constant 0 : index
    %0 = vector.load %arg1[%c0, %c0_0] : memref<128x16xf32, #tpu.memory_space<vmem>>, vector<128x16xf32>
    %1 = arith.truncf %0 : vector<128x16xf32> to vector<128x16xbf16>
    %c0_1 = arith.constant 0 : index
    %c0_2 = arith.constant 0 : index
    %2 = vector.load %arg2[%c0_1, %c0_2] : memref<16x20xbf16, #tpu.memory_space<vmem>>, vector<16x20xbf16>
    %cst = arith.constant dense<0.000000e+00> : vector<128x20xf32>
    %3 = tpu.matmul %1, %2, %cst {dimension_numbers = #tpu.dot_dimension_numbers<[1], [0], [0], [1], [0, 0, 1, 1], [], []>} : vector<128x16xbf16>, vector<16x20xbf16>, vector<128x20xf32> -> vector<128x20xf32>
    %4 = vector.extract_strided_slice %3 {offsets = [0, 0], sizes = [128, 16], strides = [1, 1]} : vector<128x20xf32> to vector<128x16xf32>
    %5 = arith.truncf %4 : vector<128x16xf32> to vector<128x16xbf16>
    %c0_3 = arith.constant 0 : index
    %c0_4 = arith.constant 0 : index
    %6 = vector.load %arg3[%c0_3, %c0_4] : memref<128x17xbf16, #tpu.memory_space<vmem>>, vector<128x16xbf16>
    tpu.vector_store %arg3[%c0_3, %c0_4], %5 {strides = array<i32>} : memref<128x17xbf16, #tpu.memory_space<vmem>>, vector<128x16xbf16>,
    %cst_5 = arith.constant 1.000000e+00 : bf16
    %7 = vector.broadcast %cst_5 : bf16 to vector<128x1xbf16>
    %c0_6 = arith.constant 0 : index
    %c16 = arith.constant 16 : index
    %8 = vector.load %arg3[%c0_6, %c16] : memref<128x17xbf16, #tpu.memory_space<vmem>>, vector<128x1xbf16>
    tpu.vector_store %arg3[%c0_6, %c16], %7 {strides = array<i32>} : memref<128x17xbf16, #tpu.memory_space<vmem>>, vector<128x1xbf16>,
    %9 = vector.extract_strided_slice %3 {offsets = [0, 16], sizes = [128, 2], strides = [1, 1]} : vector<128x20xf32> to vector<128x2xf32>
    %c0_7 = arith.constant 0 : index
    %c0_8 = arith.constant 0 : index
    %10 = vector.load %arg4[%c0_7, %c0_8] : memref<128x2xf32, #tpu.memory_space<vmem>>, vector<128x2xf32>
    tpu.vector_store %arg4[%c0_7, %c0_8], %9 {strides = array<i32>} : memref<128x2xf32, #tpu.memory_space<vmem>>, vector<128x2xf32>,
    %11 = vector.extract_strided_slice %3 {offsets = [0, 18], sizes = [128, 2], strides = [1, 1]} : vector<128x20xf32> to vector<128x2xf32>
    %c0_9 = arith.constant 0 : index
    %c0_10 = arith.constant 0 : index
    %12 = vector.load %arg5[%c0_9, %c0_10] : memref<128x2xf32, #tpu.memory_space<vmem>>, vector<128x2xf32>
    tpu.vector_store %arg5[%c0_9, %c0_10], %11 {strides = array<i32>} : memref<128x2xf32, #tpu.memory_space<vmem>>, vector<128x2xf32>,
    return
  }
  func.func @transform_0(%arg0: i32) -> (i32, i32) {
    %c0_i32 = arith.constant 0 : i32
    %c0_i32_0 = arith.constant 0 : i32
    return %arg0, %c0_i32 : i32, i32
  }
  func.func @transform_1(%arg0: i32) -> (i32, i32) {
    %c0_i32 = arith.constant 0 : i32
    %c0_i32_0 = arith.constant 0 : i32
    %c0_i32_1 = arith.constant 0 : i32
    return %c0_i32, %c0_i32_0 : i32, i32
  }
  func.func @transform_2(%arg0: i32) -> (i32, i32) {
    %c0_i32 = arith.constant 0 : i32
    %c0_i32_0 = arith.constant 0 : i32
    return %arg0, %c0_i32 : i32, i32
  }
  func.func @transform_3(%arg0: i32) -> (i32, i32) {
    %c0_i32 = arith.constant 0 : i32
    %c0_i32_0 = arith.constant 0 : i32
    return %arg0, %c0_i32 : i32, i32
  }
  func.func @transform_4(%arg0: i32) -> (i32, i32) {
    %c0_i32 = arith.constant 0 : i32
    %c0_i32_0 = arith.constant 0 : i32
    return %arg0, %c0_i32 : i32, i32
  }
}

</mosaic_0001>

<bundles_post_ra>
// kernel: tpu_custom_call.1
= control target key start
LH: loop header
LB: loop body
LE: loop exit
PB: predicated region body
PF: predicated region fallthrough
CT: control target
= control target key end

     0   :  { %s884_s15 = smov 0   ;;  %s1121_s0 = inlined_call_operand.vmem [shape: f32[256,16], index: 0, kind: input, shape index: {}]   ;;  %s1122_s1 = inlined_call_operand.vmem [shape: bf16[16,20], index: 1, kind: input, shape index: {}]   ;;  %s1123_s2 = inlined_call_operand.vmem [shape: bf16[256,17], index: 2, kind: output, shape index: {0}]   ;;  %s1124_s3 = inlined_call_operand.vmem [shape: f32[256,2], index: 3, kind: output, shape index: {1}]   ;;  %s1125_s4 = inlined_call_operand.vmem [shape: f32[256,2], index: 4, kind: output, shape index: {2}]  }
   0x1 LB: > { %s751_s16 = sadd.s32 4294967295, %s854_s15   ;;  %p755_p0 = scmp.ge.s32.totalorder %s854_s15, 1  ;;  %s854_s15 = sphi %s884_s15, %s15_s15  }
   0x2   : > { %p168_p1 = scmp.lt.s32.totalorder %s854_s15, 3 }
   0x4   : > { %p169_p2 = pnand %p755_p0, %p168_p1 }
   0x5   : > { %s756_s19 = sshll.u32 (!%p169_p2), %s751_s16, 4  ;;  %s856_s28 = smov (!%p169_p2), 112  }
   0x6   : > { %172 = sbr.rel (%p169_p2) target bundleno = 388 (0x184), region = 28  ;;  %p205_p3 = scmp.lt.s32.totalorder (!%p169_p2), %s756_s19, 31 }
   0x7   : > { %s858_s29 = smov (!%p169_p2), 110  }
   0xb   : > { %v847_v0 = vld [vmem:[%s1122_s1] sm:$0xff]   ;;  %s1127_s19 = smov (!%p205_p3, %s756_s19), 31  ;;  %vm262_vm0 = vcmask 130048   ;;  %vm448_vm1 = vcmask 125952   ;;  %vm465_vm2 = vcmask 134272   ;;  %vm546_vm3 = vcmask 15360  }
   0xc   : > { %816 = vmatprep.subr.bf16.mxu0 %v847_v0  ;;  %834 = vmatprep.subr.bf16.mxu1 %v847_v0  ;;  %s898_s20 = sshll.u32 %s1127_s19, 3  ;;  %s759_s24 = sshll.u32 %s1127_s19, 2  ;;  %v857_v32 = vmov 1065369472  }
   0xd   : > { %817 = vmatpush3.bf16.msra.mxu0 %v847_v0  ;;  %835 = vmatpush3.bf16.msra.mxu1 %v847_v0  ;;  %s208_s23 = scalar_lea.vmem %s1121_s0, %s898_s20  ;;  %s916_s27 = scalar_lea.vmem %s1123_s2, %s759_s24 }
   0xe   : > { %v230_v1 = vld [vmem:[%s208_s23] sm:$0xff]  ;;  %v231_v2 = vld [vmem:[%s208_s23 + $0x8] sm:$0xff]  ;;  %v232_v6 = vld [vmem:[%s208_s23 + $0x10] sm:$0xff]  ;;  %s1046_s6 = scalar_lea.vmem %s1124_s3, %s898_s20  ;;  %s1056_s9 = scalar_lea.vmem %s1125_s4, %s898_s20 }
   0xf   : > { %v238_v3 = vld [vmem:[%s208_s23 + $0x40] sm:$0xff]  ;;  %v246_v4 = vpack.c.bf16 %v231_v2, %v230_v1  ;;  %v239_v5 = vld [vmem:[%s208_s23 + $0x48] sm:$0xff]  ;;  %v233_v7 = vld [vmem:[%s208_s23 + $0x18] sm:$0xff] }
  0x10   : > { %v250_v8 = vpack.c.bf16 %v239_v5, %v238_v3  ;;  %v247_v9 = vpack.c.bf16 %v233_v7, %v232_v6  ;;  %v240_v10 = vld [vmem:[%s208_s23 + $0x50] sm:$0xff]  ;;  %v241_v11 = vld [vmem:[%s208_s23 + $0x58] sm:$0xff]  ;;  %v234_v12 = vld [vmem:[%s208_s23 + $0x20] sm:$0xff] }
  0x11   : > { %818 = vmatprep.mubr.msk.bf16.mxu0 %vm262_vm0, %v246_v4  ;;  %v251_v13 = vpack.c.bf16 %v241_v11, %v240_v10  ;;  %v235_v14 = vld [vmem:[%s208_s23 + $0x28] sm:$0xff]  ;;  %v242_v16 = vld [vmem:[%s208_s23 + $0x60] sm:$0xff]  ;;  %v236_v18 = vld [vmem:[%s208_s23 + $0x30] sm:$0xff] }
  0x12   : > { %826 = vmatprep.mubr.msk.bf16.mxu1 %vm262_vm0, %v250_v8  ;;  %819 = vmatmul.mubr.msk.bf16.vlgmr.msra.gmra.mxu0 %vm262_vm0, %v247_v9  ;;  %v248_v15 = vpack.c.bf16 %v235_v14, %v234_v12  ;;  %v243_v17 = vld [vmem:[%s208_s23 + $0x68] sm:$0xff]  ;;  %v237_v19 = vld [vmem:[%s208_s23 + $0x38] sm:$0xff]  ;;  %v244_v21 = vld [vmem:[%s208_s23 + $0x70] sm:$0xff] }
  0x13   : > { %827 = vmatmul.mubr.msk.bf16.vlgmr.msra.gmra.mxu1 %vm262_vm0, %v251_v13  ;;  %v252_v20 = vpack.c.bf16 %v243_v17, %v242_v16  ;;  %v245_v22 = vld [vmem:[%s208_s23 + $0x78] sm:$0xff]  ;;  %v249_v23 = vpack.c.bf16 %v237_v19, %v236_v18 }
  0x14   : > { %822 = vmatprep.mubr.msk.bf16.mxu0 %vm262_vm0, %v248_v15  ;;  %v253_v24 = vpack.c.bf16 %v245_v22, %v244_v21 }
  0x15   : > { %830 = vmatprep.mubr.msk.bf16.mxu1 %vm262_vm0, %v252_v20 }
  0x1a   : > { %823 = vmatmul.mubr.msk.bf16.gmra.mxu0 %vm262_vm0, %v249_v23 }
  0x1b   : > { %831 = vmatmul.mubr.msk.bf16.gmra.mxu1 %vm262_vm0, %v253_v24 }
  0xd2   : > { %v820_v25 = vpop.f32.mrf.mxu0 }
  0xd3   : > { %v793_v26 = vpack.c.bf16 %v820_v25, %v820_v25  ;;  %v828_v27 = vpop.f32.mrf.mxu1  ;;  %502 = vrot.lane.b32.xlu1 %v820_v25, %s856_s28 }
  0xd4   : > { %v801_v28 = vpack.c.bf16 %v828_v27, %v828_v27  ;;  %518 = vrot.lane.b32.xlu0 %v828_v27, %s856_s28  ;;  %v920_v29 = vpop.f32.mrf.mxu0 }
  0xd5   : > { %451 = vst.msk [vmem:[%s916_s27 + $0x8] sm:$0xf] %vm448_vm1, %v793_v26  ;;  %v791_v30 = vpack.c.bf16 %v920_v29, %v920_v29  ;;  %v926_v31 = vpop.f32.mrf.mxu1 }
  0xd6   : > { %468 = vst.msk [vmem:[%s916_s27 + $0x8] sm:$0xf] %vm465_vm2, %v857_v32  ;;  %v799_v33 = vpack.c.bf16 %v926_v31, %v926_v31  ;;  %v821_v34 = vpop.f32.mrf.mxu0 }
  0xd7   : > { %459 = vst.msk [vmem:[%s916_s27 + $0x28] sm:$0xf] %vm448_vm1, %v801_v28  ;;  %449 = vst.msk [vmem:[%s916_s27] sm:$0xf] %vm448_vm1, %v791_v30  ;;  %v794_v35 = vpack.c.bf16 %v821_v34, %v821_v34  ;;  %v829_v36 = vpop.f32.mrf.mxu1  ;;  %504 = vrot.lane.b32.xlu1 %v821_v34, %s856_s28 }
  0xd8   : > { %476 = vst.msk [vmem:[%s916_s27 + $0x28] sm:$0xf] %vm465_vm2, %v857_v32  ;;  %466 = vst.msk [vmem:[%s916_s27] sm:$0xf] %vm465_vm2, %v857_v32  ;;  %v802_v37 = vpack.c.bf16 %v829_v36, %v829_v36  ;;  %567 = vrot.lane.b32.xlu0 %v820_v25, %s858_s29  ;;  %v324_v38 = vpop.f32.mrf.mxu0 }
  0xd9   : > { %457 = vst.msk [vmem:[%s916_s27 + $0x20] sm:$0xf] %vm448_vm1, %v799_v33  ;;  %452 = vst.msk [vmem:[%s916_s27 + $0xc] sm:$0xf] %vm448_vm1, %v794_v35  ;;  %v792_v39 = vpack.c.bf16 %v324_v38, %v324_v38  ;;  %v356_v40 = vpop.f32.mrf.mxu1 }
  0xda   : > { %474 = vst.msk [vmem:[%s916_s27 + $0x20] sm:$0xf] %vm465_vm2, %v857_v32  ;;  %469 = vst.msk [vmem:[%s916_s27 + $0xc] sm:$0xf] %vm465_vm2, %v857_v32  ;;  %v800_v41 = vpack.c.bf16 %v356_v40, %v356_v40  ;;  %v824_v42 = vpop.f32.mrf.mxu0 }
  0xdb   : > { %460 = vst.msk [vmem:[%s916_s27 + $0x2c] sm:$0xf] %vm448_vm1, %v802_v37  ;;  %450 = vst.msk [vmem:[%s916_s27 + $0x4] sm:$0xf] %vm448_vm1, %v792_v39  ;;  %520 = vrot.lane.b32.xlu1 %v829_v36, %s856_s28  ;;  %v797_v43 = vpack.c.bf16 %v824_v42, %v824_v42  ;;  %v832_v44 = vpop.f32.mrf.mxu1 }
  0xdc   : > { %477 = vst.msk [vmem:[%s916_s27 + $0x2c] sm:$0xf] %vm465_vm2, %v857_v32  ;;  %467 = vst.msk [vmem:[%s916_s27 + $0x4] sm:$0xf] %vm465_vm2, %v857_v32  ;;  %583 = vrot.lane.b32.xlu0 %v828_v27, %s858_s29  ;;  %v337_v45 = vpop.f32.mrf.mxu0  ;;  %v805_v46 = vpack.c.bf16 %v832_v44, %v832_v44 }
  0xdd   : > { %458 = vst.msk [vmem:[%s916_s27 + $0x24] sm:$0xf] %vm448_vm1, %v800_v41  ;;  %455 = vst.msk [vmem:[%s916_s27 + $0x18] sm:$0xf] %vm448_vm1, %v797_v43  ;;  %v795_v47 = vpack.c.bf16 %v337_v45, %v337_v45  ;;  %v369_v48 = vpop.f32.mrf.mxu1 }
  0xde   : > { %475 = vst.msk [vmem:[%s916_s27 + $0x24] sm:$0xf] %vm465_vm2, %v857_v32  ;;  %472 = vst.msk [vmem:[%s916_s27 + $0x18] sm:$0xf] %vm465_vm2, %v857_v32  ;;  %v825_v49 = vpop.f32.mrf.mxu0  ;;  %v803_v50 = vpack.c.bf16 %v369_v48, %v369_v48 }
  0xdf   : > { %463 = vst.msk [vmem:[%s916_s27 + $0x38] sm:$0xf] %vm448_vm1, %v805_v46  ;;  %569 = vrot.lane.b32.xlu1 %v821_v34, %s858_s29  ;;  %453 = vst.msk [vmem:[%s916_s27 + $0x10] sm:$0xf] %vm448_vm1, %v795_v47  ;;  %v798_v51 = vpack.c.bf16 %v825_v49, %v825_v49  ;;  %v833_v52 = vpop.f32.mrf.mxu1 }
  0xe0   : > { %480 = vst.msk [vmem:[%s916_s27 + $0x38] sm:$0xf] %vm465_vm2, %v857_v32  ;;  %498 = vrot.lane.b32.xlu0 %v920_v29, %s856_s28  ;;  %470 = vst.msk [vmem:[%s916_s27 + $0x10] sm:$0xf] %vm465_vm2, %v857_v32  ;;  %v340_v53 = vpop.f32.mrf.mxu0  ;;  %v806_v54 = vpack.c.bf16 %v833_v52, %v833_v52 }
  0xe1   : > { %461 = vst.msk [vmem:[%s916_s27 + $0x30] sm:$0xf] %vm448_vm1, %v803_v50  ;;  %456 = vst.msk [vmem:[%s916_s27 + $0x1c] sm:$0xf] %vm448_vm1, %v798_v51  ;;  %v796_v55 = vpack.c.bf16 %v340_v53, %v340_v53  ;;  %v372_v56 = vpop.f32.mrf.mxu1 }
  0xe2   : > { %478 = vst.msk [vmem:[%s916_s27 + $0x30] sm:$0xf] %vm465_vm2, %v857_v32  ;;  %473 = vst.msk [vmem:[%s916_s27 + $0x1c] sm:$0xf] %vm465_vm2, %v857_v32  ;;  %v804_v57 = vpack.c.bf16 %v372_v56, %v372_v56 }
  0xe3   : > { %464 = vst.msk [vmem:[%s916_s27 + $0x3c] sm:$0xf] %vm448_vm1, %v806_v54  ;;  %585 = vrot.lane.b32.xlu1 %v829_v36, %s858_s29  ;;  %454 = vst.msk [vmem:[%s916_s27 + $0x14] sm:$0xf] %vm448_vm1, %v796_v55 }
  0xe4   : > { %481 = vst.msk [vmem:[%s916_s27 + $0x3c] sm:$0xf] %vm465_vm2, %v857_v32  ;;  %514 = vrot.lane.b32.xlu0 %v926_v31, %s856_s28  ;;  %471 = vst.msk [vmem:[%s916_s27 + $0x14] sm:$0xf] %vm465_vm2, %v857_v32 }
  0xe5   : > { %462 = vst.msk [vmem:[%s916_s27 + $0x34] sm:$0xf] %vm448_vm1, %v804_v57 }
  0xe6   : > { %479 = vst.msk [vmem:[%s916_s27 + $0x34] sm:$0xf] %vm465_vm2, %v857_v32 }
  0xe7   : > { %516 = vrot.lane.b32.xlu1 %v356_v40, %s856_s28 }
  0xe8   : > { %563 = vrot.lane.b32.xlu0 %v920_v29, %s858_s29 }
  0xeb   : > { %565 = vrot.lane.b32.xlu1 %v324_v38, %s858_s29 }
  0xec   : > { %579 = vrot.lane.b32.xlu0 %v926_v31, %s858_s29 }
  0xef   : > { %581 = vrot.lane.b32.xlu1 %v356_v40, %s858_s29 }
  0xf0   : > { %500 = vrot.lane.b32.xlu0 %v324_v38, %s856_s28 }
  0xf3   : > { %512 = vrot.lane.b32.xlu1 %v825_v49, %s856_s28 }
  0xf4   : > { %510 = vrot.lane.b32.xlu0 %v824_v42, %s856_s28 }
  0xf7   : > { %528 = vrot.lane.b32.xlu1 %v833_v52, %s856_s28 }
  0xf8   : > { %526 = vrot.lane.b32.xlu0 %v832_v44, %s856_s28 }
  0xfb   : > { %577 = vrot.lane.b32.xlu1 %v825_v49, %s858_s29 }
  0xfc   : > { %575 = vrot.lane.b32.xlu0 %v824_v42, %s858_s29 }
  0xff   : > { %508 = vrot.lane.b32.xlu1 %v340_v53, %s856_s28 }
 0x100   : > { %506 = vrot.lane.b32.xlu0 %v337_v45, %s856_s28 }
 0x103   : > { %524 = vrot.lane.b32.xlu1 %v372_v56, %s856_s28 }
 0x104   : > { %522 = vrot.lane.b32.xlu0 %v369_v48, %s856_s28 }
 0x107   : > { %573 = vrot.lane.b32.xlu1 %v340_v53, %s858_s29 }
 0x108   : > { %571 = vrot.lane.b32.xlu0 %v337_v45, %s858_s29 }
 0x10b   : > { %589 = vrot.lane.b32.xlu1 %v372_v56, %s858_s29 }
 0x10c   : > { %587 = vrot.lane.b32.xlu0 %v369_v48, %s858_s29 }
 0x10f   : > { %593 = vrot.lane.b32.xlu1 %v833_v52, %s858_s29 }
 0x110   : > { %591 = vrot.lane.b32.xlu0 %v832_v44, %s858_s29 }
 0x145   : > { %v503_v58 = vpop.permute.xlu1 %502 }
 0x146   : > { %v519_v59 = vpop.permute.xlu0 %518  ;;  %549 = vst.msk [vmem:[%s1046_s6 + $0x10] sm:$0xff] %vm546_vm3, %v503_v58 }
 0x147   : > { %557 = vst.msk [vmem:[%s1046_s6 + $0x50] sm:$0xff] %vm546_vm3, %v519_v59 }
 0x149   : > { %v505_v60 = vpop.permute.xlu1 %504 }
 0x14a   : > { %v568_v61 = vpop.permute.xlu0 %567  ;;  %550 = vst.msk [vmem:[%s1046_s6 + $0x18] sm:$0xff] %vm546_vm3, %v505_v60 }
 0x14b   : > { %613 = vst.msk [vmem:[%s1056_s9 + $0x10] sm:$0xff] %vm546_vm3, %v568_v61 }
 0x14d   : > { %v521_v62 = vpop.permute.xlu1 %520 }
 0x14e   : > { %v584_v63 = vpop.permute.xlu0 %583  ;;  %558 = vst.msk [vmem:[%s1046_s6 + $0x58] sm:$0xff] %vm546_vm3, %v521_v62 }
 0x14f   : > { %621 = vst.msk [vmem:[%s1056_s9 + $0x50] sm:$0xff] %vm546_vm3, %v584_v63 }
 0x151   : > { %v570_v0 = vpop.permute.xlu1 %569 }
 0x152   : > { %v499_v1 = vpop.permute.xlu0 %498  ;;  %614 = vst.msk [vmem:[%s1056_s9 + $0x18] sm:$0xff] %vm546_vm3, %v570_v0 }
 0x153   : > { %547 = vst.msk [vmem:[%s1046_s6] sm:$0xff] %vm546_vm3, %v499_v1 }
 0x155   : > { %v586_v2 = vpop.permute.xlu1 %585 }
 0x156   : > { %v515_v3 = vpop.permute.xlu0 %514  ;;  %622 = vst.msk [vmem:[%s1056_s9 + $0x58] sm:$0xff] %vm546_vm3, %v586_v2 }
 0x157   : > { %555 = vst.msk [vmem:[%s1046_s6 + $0x40] sm:$0xff] %vm546_vm3, %v515_v3 }
 0x159   : > { %v517_v4 = vpop.permute.xlu1 %516 }
 0x15a   : > { %v564_v5 = vpop.permute.xlu0 %563  ;;  %556 = vst.msk [vmem:[%s1046_s6 + $0x48] sm:$0xff] %vm546_vm3, %v517_v4 }
 0x15b   : > { %611 = vst.msk [vmem:[%s1056_s9] sm:$0xff] %vm546_vm3, %v564_v5 }
 0x15d   : > { %v566_v6 = vpop.permute.xlu1 %565 }
 0x15e   : > { %v580_v7 = vpop.permute.xlu0 %579  ;;  %612 = vst.msk [vmem:[%s1056_s9 + $0x8] sm:$0xff] %vm546_vm3, %v566_v6 }
 0x15f   : > { %619 = vst.msk [vmem:[%s1056_s9 + $0x40] sm:$0xff] %vm546_vm3, %v580_v7 }
 0x161   : > { %v582_v8 = vpop.permute.xlu1 %581 }
 0x162   : > { %620 = vst.msk [vmem:[%s1056_s9 + $0x48] sm:$0xff] %vm546_vm3, %v582_v8  ;;  %v501_v9 = vpop.permute.xlu0 %500 }
 0x163   : > { %548 = vst.msk [vmem:[%s1046_s6 + $0x8] sm:$0xff] %vm546_vm3, %v501_v9 }
 0x165   : > { %v513_v10 = vpop.permute.xlu1 %512 }
 0x166   : > { %v511_v11 = vpop.permute.xlu0 %510  ;;  %554 = vst.msk [vmem:[%s1046_s6 + $0x38] sm:$0xff] %vm546_vm3, %v513_v10 }
 0x167   : > { %553 = vst.msk [vmem:[%s1046_s6 + $0x30] sm:$0xff] %vm546_vm3, %v511_v11 }
 0x169   : > { %v529_v12 = vpop.permute.xlu1 %528 }
 0x16a   : > { %v527_v13 = vpop.permute.xlu0 %526  ;;  %562 = vst.msk [vmem:[%s1046_s6 + $0x78] sm:$0xff] %vm546_vm3, %v529_v12 }
 0x16b   : > { %561 = vst.msk [vmem:[%s1046_s6 + $0x70] sm:$0xff] %vm546_vm3, %v527_v13 }
 0x16d   : > { %v578_v14 = vpop.permute.xlu1 %577 }
 0x16e   : > { %v576_v15 = vpop.permute.xlu0 %575  ;;  %618 = vst.msk [vmem:[%s1056_s9 + $0x38] sm:$0xff] %vm546_vm3, %v578_v14 }
 0x16f   : > { %617 = vst.msk [vmem:[%s1056_s9 + $0x30] sm:$0xff] %vm546_vm3, %v576_v15 }
 0x171   : > { %v509_v16 = vpop.permute.xlu1 %508 }
 0x172   : > { %v507_v17 = vpop.permute.xlu0 %506  ;;  %552 = vst.msk [vmem:[%s1046_s6 + $0x28] sm:$0xff] %vm546_vm3, %v509_v16 }
 0x173   : > { %551 = vst.msk [vmem:[%s1046_s6 + $0x20] sm:$0xff] %vm546_vm3, %v507_v17 }
 0x175   : > { %v525_v18 = vpop.permute.xlu1 %524 }
 0x176   : > { %v523_v19 = vpop.permute.xlu0 %522  ;;  %560 = vst.msk [vmem:[%s1046_s6 + $0x68] sm:$0xff] %vm546_vm3, %v525_v18 }
 0x177   : > { %559 = vst.msk [vmem:[%s1046_s6 + $0x60] sm:$0xff] %vm546_vm3, %v523_v19 }
 0x179   : > { %v574_v20 = vpop.permute.xlu1 %573 }
 0x17a   : > { %v572_v21 = vpop.permute.xlu0 %571  ;;  %616 = vst.msk [vmem:[%s1056_s9 + $0x28] sm:$0xff] %vm546_vm3, %v574_v20 }
 0x17b   : > { %615 = vst.msk [vmem:[%s1056_s9 + $0x20] sm:$0xff] %vm546_vm3, %v572_v21 }
 0x17d   : > { %v590_v22 = vpop.permute.xlu1 %589 }
 0x17e   : > { %v588_v23 = vpop.permute.xlu0 %587  ;;  %624 = vst.msk [vmem:[%s1056_s9 + $0x68] sm:$0xff] %vm546_vm3, %v590_v22 }
 0x17f   : > { %623 = vst.msk [vmem:[%s1056_s9 + $0x60] sm:$0xff] %vm546_vm3, %v588_v23 }
 0x181   : > { %v594_v24 = vpop.permute.xlu1 %593 }
 0x182   : > { %v592_v25 = vpop.permute.xlu0 %591  ;;  %626 = vst.msk [vmem:[%s1056_s9 + $0x78] sm:$0xff] %vm546_vm3, %v594_v24 }
 0x183   : > { %625 = vst.msk [vmem:[%s1056_s9 + $0x70] sm:$0xff] %vm546_vm3, %v592_v25 }
 0x184 PF: > { %s15_s15 = sadd.s32 1, %s854_s15  }
 0x185   : > { %p12_p4 = scmp.ge.s32.totalorder %s15_s15, 4  }
 0x187   :  { %14 = sbr.rel (!%p12_p4) target bundleno = 1 (0x1), region = 82 }

</bundles_post_ra>
